<compile_context>
chip_gen: v7x
topology: tpu7x:2x2x1
jax: 0.10.0
libtpu: 0.0.40
codegen_flags: <defaults>
</compile_context>

<pallas_src>
import functools

import jax
import jax.numpy as jnp
from jax.experimental import pallas as pl
from jax.experimental.pallas import tpu as pltpu


def _round_up(n, m):
    return ((n + m - 1) // m) * m


def _cdiv(a, b):
    return -(-a // b)


def _passive_model_kernel(x_ref, w1_ref, b1_ref, w2_ref, o_ref):
    # Fused: matmul1 + bias -> LeakyReLU -> matmul2 for one batch tile.
    x = x_ref[...]
    h = jnp.dot(x, w1_ref[...], preferred_element_type=jnp.float32)
    h = h + b1_ref[...]                           # bias broadcast over rows
    h = jnp.where(h > 0, h, 0.01 * h)             # LeakyReLU (slope 0.01)
    y = jnp.dot(h, w2_ref[...], preferred_element_type=jnp.float32)
    o_ref[...] = y.astype(o_ref.dtype)


def _choose_batch_tiling(B, block_b):
    """Balanced batch tiles: each <= block_b rows, multiple of 8 rows, and
    >= 2 grid steps when the batch allows (keeps both v7x TCs busy)."""
    n_steps = max(1, _cdiv(B, block_b))
    if B >= 16:                       # two tiles of >= 8 rows are possible
        n_steps = max(n_steps, 2)
    TB = _round_up(_cdiv(B, n_steps), 8)
    B_p = _round_up(B, TB)
    return TB, B_p


def _passive_model_forward_impl(x, w1_t, b1, w2_t, *, block_b=2048):
    """x: [B, input_dim]; w1_t: [input_dim, 2*input_dim]; b1: [1, 2*input_dim];
    w2_t: [2*input_dim, output_dim]. Returns [B, output_dim]."""
    B, D = x.shape
    H = w1_t.shape[1]
    O = w2_t.shape[1]

    TB, B_p = _choose_batch_tiling(B, block_b)
    grid = (B_p // TB,)

    # Only the batch dim is padded (zero rows -> zero outputs, sliced off).
    x_p = jnp.pad(x, ((0, B_p - B), (0, 0))) if B_p != B else x

    y_p = pl.pallas_call(
        _passive_model_kernel,
        out_shape=jax.ShapeDtypeStruct((B_p, O), x.dtype),
        grid_spec=pl.GridSpec(
            grid=grid,
            in_specs=[
                # x tile streams with the grid step (double-buffered by Pallas)
                pl.BlockSpec((TB, D), lambda i: (i, 0)),
                # weights / bias: constant block index -> resident in VMEM
                pl.BlockSpec((D, H), lambda i: (0, 0)),
                pl.BlockSpec((1, H), lambda i: (0, 0)),
                pl.BlockSpec((H, O), lambda i: (0, 0)),
            ],
            out_specs=pl.BlockSpec((TB, O), lambda i: (i, 0)),
        ),
        compiler_params=pltpu.CompilerParams(
            dimension_semantics=("parallel",),
            vmem_limit_bytes=32 * 1024 * 1024,
        ),
    )(x_p, w1_t, b1, w2_t)

    return y_p[:B] if B_p != B else y_p


passive_model_forward = jax.jit(
    _passive_model_forward_impl, static_argnames=("block_b",))


def init_params(key, input_dim, output_dim, dtype=jnp.float32):
    """Deterministic init mimicking PyTorch nn.Linear default
    (uniform(-1/sqrt(fan_in), 1/sqrt(fan_in)))."""
    hidden = input_dim * 2
    k1, k2, k3 = jax.random.split(key, 3)
    bound1 = 1.0 / (input_dim ** 0.5)
    bound2 = 1.0 / (hidden ** 0.5)
    # Stored already transposed to [in, out] for the kernel.
    w1_t = jax.random.uniform(k1, (input_dim, hidden), dtype, -bound1, bound1)
    b1 = jax.random.uniform(k2, (1, hidden), dtype, -bound1, bound1)
    w2_t = jax.random.uniform(k3, (hidden, output_dim), dtype, -bound2, bound2)
    return w1_t, b1, w2_t


def _reference(x, w1_t, b1, w2_t):
    h = x @ w1_t + b1
    h = jnp.where(h > 0, h, 0.01 * h)
    return h @ w2_t


if __name__ == "__main__":
    key = jax.random.PRNGKey(0)
    kx, kp = jax.random.split(key)

    batch, input_dim, output_dim = 8, 32, 16   # intern_dim is unused by the module
    x = jax.random.normal(kx, (batch, input_dim), dtype=jnp.float32)
    w1_t, b1, w2_t = init_params(kp, input_dim, output_dim)

    y = passive_model_forward(x, w1_t, b1, w2_t)
    y = jax.block_until_ready(y)

    y_ref = _reference(x, w1_t, b1, w2_t)
    assert y.shape == (batch, output_dim)
    assert jnp.allclose(y, y_ref, atol=1e-5, rtol=1e-5)

    # Larger, non-multiple batch to exercise the multi-step (balanced) grid.
    x_big = jax.random.normal(kx, (1037, input_dim), dtype=jnp.float32)
    y_big = jax.block_until_ready(passive_model_forward(x_big, w1_t, b1, w2_t))
    assert y_big.shape == (1037, output_dim)
    assert jnp.allclose(y_big, _reference(x_big, w1_t, b1, w2_t),
                        atol=1e-4, rtol=1e-4)

    print("KERNEL_OK")
</pallas_src>

<mosaic_0001>
module attributes {stable_mosaic.version = 11 : i64} {
  func.func @_passive_model_kernel(%arg0: i32, %arg1: memref<8x32xf32, #tpu.memory_space<vmem>>, %arg2: memref<32x64xf32, #tpu.memory_space<vmem>>, %arg3: memref<1x64xf32, #tpu.memory_space<vmem>>, %arg4: memref<64x16xf32, #tpu.memory_space<vmem>>, %arg5: memref<8x16xf32, #tpu.memory_space<vmem>>) attributes {dimension_semantics = [#tpu.dimension_semantics<parallel>], iteration_bounds = array<i64: 1>, scalar_prefetch = 0 : i64, scratch_operands = 0 : i64, tpu.core_type = #tpu.core_type<tc>, window_params = [{transform_indices = @transform_0, window_bounds = array<i64: 8, 32>}, {pipeline_mode = #tpu.pipeline_mode<synchronous>, transform_indices = @transform_1, window_bounds = array<i64: 32, 64>}, {pipeline_mode = #tpu.pipeline_mode<synchronous>, transform_indices = @transform_2, window_bounds = array<i64: 1, 64>}, {pipeline_mode = #tpu.pipeline_mode<synchronous>, transform_indices = @transform_3, window_bounds = array<i64: 64, 16>}, {transform_indices = @transform_4, window_bounds = array<i64: 8, 16>}]} {
    %c0 = arith.constant 0 : index
    %c0_0 = arith.constant 0 : index
    %0 = vector.load %arg1[%c0, %c0_0] : memref<8x32xf32, #tpu.memory_space<vmem>>, vector<8x32xf32>
    %c0_1 = arith.constant 0 : index
    %c0_2 = arith.constant 0 : index
    %1 = vector.load %arg2[%c0_1, %c0_2] : memref<32x64xf32, #tpu.memory_space<vmem>>, vector<32x64xf32>
    %cst = arith.constant dense<0.000000e+00> : vector<8x64xf32>
    %2 = tpu.matmul %0, %1, %cst {dimension_numbers = #tpu.dot_dimension_numbers<[1], [0], [0], [1], [0, 0, 1, 1], [], []>} : vector<8x32xf32>, vector<32x64xf32>, vector<8x64xf32> -> vector<8x64xf32>
    %c0_3 = arith.constant 0 : index
    %c0_4 = arith.constant 0 : index
    %3 = vector.load %arg3[%c0_3, %c0_4] : memref<1x64xf32, #tpu.memory_space<vmem>>, vector<1x64xf32>
    %4 = vector.broadcast %3 : vector<1x64xf32> to vector<8x64xf32>
    %5 = arith.addf %2, %4 : vector<8x64xf32>
    %cst_5 = arith.constant 0.000000e+00 : f32
    %6 = vector.broadcast %cst_5 : f32 to vector<8x64xf32>
    %7 = arith.cmpf ogt, %5, %6 : vector<8x64xf32>
    %cst_6 = arith.constant 0.00999999977 : f32
    %8 = vector.broadcast %cst_6 : f32 to vector<8x64xf32>
    %9 = arith.mulf %8, %5 : vector<8x64xf32>
    %10 = arith.select %7, %5, %9 : vector<8x64xi1>, vector<8x64xf32>
    %c0_7 = arith.constant 0 : index
    %c0_8 = arith.constant 0 : index
    %11 = vector.load %arg4[%c0_7, %c0_8] : memref<64x16xf32, #tpu.memory_space<vmem>>, vector<64x16xf32>
    %cst_9 = arith.constant dense<0.000000e+00> : vector<8x16xf32>
    %12 = tpu.matmul %10, %11, %cst_9 {dimension_numbers = #tpu.dot_dimension_numbers<[1], [0], [0], [1], [0, 0, 1, 1], [], []>} : vector<8x64xf32>, vector<64x16xf32>, vector<8x16xf32> -> vector<8x16xf32>
    %c0_10 = arith.constant 0 : index
    %c0_11 = arith.constant 0 : index
    %13 = vector.load %arg5[%c0_10, %c0_11] : memref<8x16xf32, #tpu.memory_space<vmem>>, vector<8x16xf32>
    tpu.vector_store %arg5[%c0_10, %c0_11], %12 {strides = array<i32>} : memref<8x16xf32, #tpu.memory_space<vmem>>, vector<8x16xf32>,
    return
  }
  func.func @transform_0(%arg0: i32) -> (i32, i32) {
    %c0_i32 = arith.constant 0 : i32
    %c0_i32_0 = arith.constant 0 : i32
    return %arg0, %c0_i32 : i32, i32
  }
  func.func @transform_1(%arg0: i32) -> (i32, i32) {
    %c0_i32 = arith.constant 0 : i32
    %c0_i32_0 = arith.constant 0 : i32
    %c0_i32_1 = arith.constant 0 : i32
    return %c0_i32, %c0_i32_0 : i32, i32
  }
  func.func @transform_2(%arg0: i32) -> (i32, i32) {
    %c0_i32 = arith.constant 0 : i32
    %c0_i32_0 = arith.constant 0 : i32
    %c0_i32_1 = arith.constant 0 : i32
    return %c0_i32, %c0_i32_0 : i32, i32
  }
  func.func @transform_3(%arg0: i32) -> (i32, i32) {
    %c0_i32 = arith.constant 0 : i32
    %c0_i32_0 = arith.constant 0 : i32
    %c0_i32_1 = arith.constant 0 : i32
    return %c0_i32, %c0_i32_0 : i32, i32
  }
  func.func @transform_4(%arg0: i32) -> (i32, i32) {
    %c0_i32 = arith.constant 0 : i32
    %c0_i32_0 = arith.constant 0 : i32
    return %arg0, %c0_i32 : i32, i32
  }
}

</mosaic_0001>

<bundles_post_ra>
// kernel: _passive_model_forward_impl.1
= control target key start
LH: loop header
LB: loop body
LE: loop exit
PB: predicated region body
PF: predicated region fallthrough
CT: control target
= control target key end

     0   :  { %v298_v3 = vmov 0.0|0.0   ;;  %vm299_vm0 = vmmov 0   ;;  %v300_v6 = vmov 0.0   ;;  %s381_s0 = inlined_call_operand.vmem [shape: f32[8,32], index: 0, kind: input, shape index: {}]   ;;  %s382_s1 = inlined_call_operand.vmem [shape: f32[32,64], index: 1, kind: input, shape index: {}]   ;;  %s383_s2 = inlined_call_operand.vmem [shape: f32[1,64], index: 2, kind: input, shape index: {}]   ;;  %s384_s3 = inlined_call_operand.vmem [shape: f32[64,16], index: 3, kind: input, shape index: {}]   ;;  %s385_s4 = inlined_call_operand.hbm [shape: f32[8,16], index: 4, kind: output, shape index: {}]  }
   0x1   :  { %v19_v0 = vld [vmem:[%s382_s1] sm:$0xff]  ;;  %v20_v1 = vld [vmem:[%s382_s1 + $0x8] sm:$0xff]  ;;  %v21_v2 = vld [vmem:[%s382_s1 + $0x10] sm:$0xff]  ;;  %252 = vmatprep.subr.bf16.mxu0 %v298_v3  ;;  %230 = vmatprep.mubr.msk.f32.mxu0 %vm299_vm0, %v300_v6 }
   0x2   :  { %v253_v4 = vpack.c.bf16 %v20_v1, %v19_v0  ;;  %v22_v5 = vld [vmem:[%s382_s1 + $0x18] sm:$0xff]  ;;  %v107_v7 = vld [vmem:[%s384_s3] sm:$0xff]  ;;  %258 = vmatprep.subr.bf16.mxu1 %v298_v3  ;;  %v108_v8 = vld [vmem:[%s384_s3 + $0x8] sm:$0xff]  ;;  %249 = vmatprep.mubr.msk.f32.mxu1 %vm299_vm0, %v300_v6 }
   0x3   :  { %v109_v9 = vld [vmem:[%s384_s3 + $0x10] sm:$0xff]  ;;  %v110_v10 = vld [vmem:[%s384_s3 + $0x18] sm:$0xff]  ;;  %v256_v11 = vpack.c.bf16 %v22_v5, %v21_v2  ;;  %v259_v12 = vpack.c.bf16 %v108_v8, %v107_v7 }
   0x4   :  { %254 = vmatpush3.bf16.msra.mxu0 %v253_v4 }
   0x5   :  { %255 = vmatprep.subr.bf16.mxu0 %v298_v3 }
   0x6   :  { %9 = vsyncpa [#allocation3], 0  ;;  %260 = vmatpush3.bf16.msra.mxu1 %v259_v12  ;;  %v262_v13 = vpack.c.bf16 %v110_v10, %v109_v9  ;;  %v111_v14 = vld [vmem:[%s384_s3 + $0x20] sm:$0xff]  ;;  %v112_v15 = vld [vmem:[%s384_s3 + $0x28] sm:$0xff]  ;;  %vm30_vm1 = vcmask 261120   ;;  %vm115_vm3 = vcmask 523264  }
   0x7   :  { %261 = vmatprep.subr.bf16.mxu1 %v298_v3  ;;  %v18_v16 = vld [vmem:[%s381_s0] sm:$0xff]  ;;  %v265_v17 = vpack.c.bf16 %v112_v15, %v111_v14  ;;  %v113_v18 = vld [vmem:[%s384_s3 + $0x30] sm:$0xff]  ;;  %v114_v19 = vld [vmem:[%s384_s3 + $0x38] sm:$0xff]  ;;  %s301_s0 = smov [#allocation2]   ;;  %vm189_vm4 = vcmask 130048  }
   0x8   :  { %257 = vmatpush3.bf16.msra.mxu0 %v256_v11  ;;  %v268_v20 = vpack.c.bf16 %v114_v19, %v113_v18  ;;  %v205_v21 = vld [vmem:[%s383_s2] ss:$0 sm:$0xff]  ;;  %s197_s16 = sshll.u32 %s301_s0, 4  ;;  %s198_s16 = int_to_ptr.vmem [resolvable:$true] %s197_s16 }
   0x9   :  { %s274_s3 = scalar_lea.vmem %s198_s16, 128  ;;  %p279_p1 = scmp.lt.s32.totalorder %s198_s16, %s198_s16 }
   0xa   :  { %263 = vmatpush3.bf16.msra.mxu1 %v262_v13  ;;  %p275_p0 = scmp.ne.s32.totalorder %s198_s16, %s274_s3  ;;  %p280_p2 = scmp.lt.s32.totalorder %s274_s3, %s274_s3 }
   0xb   :  { %231 = vmatmul.mubr.msk.f32.vlgmr.msra.gmra.mrb[0].mxu0 %vm30_vm1, %v18_v16  ;;  %264 = vmatprep.subr.bf16.mxu1 %v298_v3 }
   0xc   :  { %p281_p3 = por %p280_p2, %p279_p1 }
   0xe   :  { %266 = vmatpush3.bf16.msra.mxu1 %v265_v17  ;;  %p282_p4 = pnand %p281_p3, %p275_p0 }
   0xf   :  { %267 = vmatprep.subr.bf16.mxu1 %v298_v3 }
  0x12   :  { %269 = vmatpush3.bf16.msra.mxu1 %v268_v20 }
  0xde   :  { %v100_v22 = vpop.f32.mrb[0].mxu0 }
  0xdf   :  { %v101_v23 = vadd.f32 %v205_v21, %v100_v22  ;;  %v232_v24 = vpop.f32.mrb[1].mxu0 }
  0xe1   :  { %vm104_vm2 = vcmp.gt.f32.partialorder %v101_v23, 0.0  ;;  %v105_v25 = vmul.f32 0.01, %v101_v23 }
  0xe3   :  { %v106_v26 = vsel %vm104_vm2, %v101_v23, %v105_v25 }
  0xe4   :  { %250 = vmatmul.mubr.msk.f32.vlgmr.msra.gmra.mrb[0].mxu1 %vm115_vm3, %v106_v26 }
 0x1b7   :  { %v185_v27 = vpop.f32.mrb[0].mxu1 }
 0x1b8   :  { %190 = vst.msk [vmem:[#allocation2] sm:$0xff] %vm189_vm4, %v185_v27  ;;  %v251_v28 = vpop.f32.mrb[1].mxu1 }
 0x1b9   :  { %285 = shalt.err (!%p282_p4)
}
 0x1ba   :  { %s286_s18 = scalar_lea.hbm %s385_s4, 128 }
 0x1bb   :  { %p287_p5 = scmp.ne.s32.totalorder %s385_s4, %s286_s18  ;;  %p290_p6 = scmp.lt.u32.totalorder %s286_s18, %s385_s4 }
 0x1bd   :  { %p292_p7 = pnand %p290_p6, %p287_p5 }
 0x1bf   :  { %295 = shalt.err (!%p292_p7)
}
 0x1c0   :  { %200 = dma.vmem_to_hbm [thread:$0]  %s198_s16, 128, %s385_s4, [#allocation3]  }
 0x1c1   :  { %296 = dma.done.wait [#allocation3], 128  }
 0x1c2   :  { %297 = vsyncadd [#allocation3], 4294967168 }
 0x1c3   :  { %204 = vsyncpa [#allocation3], 1 }

</bundles_post_ra>
